<compile_context>
chip_gen: v6e
topology: v6e:2x2x1
jax: 0.10.0
libtpu: 0.0.40
codegen_flags: <defaults>
</compile_context>

<pallas_src>
import jax
import jax.numpy as jnp
from jax import lax
from jax.experimental import pallas as pl
from jax.experimental.pallas import tpu as pltpu

FRAMES = 4      # sequence length
HIDDEN = 32
LAYERS = 1


def _net_kernel(x_ref, h0_ref, c0_ref, wih_ref, whh_ref, head_ref,
                probs_ref, hn_ref, cn_ref):
    seq = x_ref.shape[0]
    batch = h0_ref.shape[0]
    H = h0_ref.shape[1]

    def dot_nt(a, b_ref):
        # a @ b^T without materializing a transpose (MXU supports NT contraction).
        return lax.dot_general(a, b_ref[...],
                               dimension_numbers=(((1,), (1,)), ((), ())),
                               preferred_element_type=jnp.float32)

    # --- Hoisted input projection: independent of h, so it is off the serial
    #     recurrence critical path and can be overlapped by the scheduler. ---
    xw = [dot_nt(x_ref[t], wih_ref) for t in range(seq)]      # each (batch, 4H)

    # --- Recurrence, fully unrolled (seq is small and static). ---
    h = h0_ref[...]
    c = c0_ref[...]
    last_rows = []                                            # per-step h of last batch row
    for t in range(seq):
        gates = xw[t] + dot_nt(h, whh_ref)                    # (batch, 4H); 4H = 128 lanes
        sig = jax.nn.sigmoid(gates)                           # one full-width EUP pass
        tah = jnp.tanh(gates)                                 # one full-width EUP pass
        i = sig[:, 0 * H:1 * H]
        f = sig[:, 1 * H:2 * H]
        g = tah[:, 2 * H:3 * H]
        o = sig[:, 3 * H:4 * H]
        c = f * c + i * g
        h = o * jnp.tanh(c)
        last_rows.append(h[batch - 1:batch, :])               # (1, H): only what the head needs

    hn_ref[...] = h
    cn_ref[...] = c

    # x[:, -1] -> hidden states of the LAST batch element over all timesteps.
    last_h = jnp.concatenate(last_rows, axis=0)               # (seq, H)
    logits = dot_nt(last_h, head_ref)                         # (seq, A)
    m = jnp.max(logits, axis=-1, keepdims=True)
    e = jnp.exp(logits - m)
    probs_ref[...] = e / jnp.sum(e, axis=-1, keepdims=True)


def net_forward(state, hidden_state, lstm1_w, lstm2_w, fc_w):
    """state: (seq, batch, state_size); hidden_state: (h0, c0) each (layers, batch, hidden).

    Weights are passed in their native PyTorch layouts:
      lstm1_w (4H, S)  = weight_ih_l0, lstm2_w (4H, H) = weight_hh_l0, fc_w (A, H) = head.weight.
    """
    h0, c0 = hidden_state
    seq, batch, _ = state.shape
    H = lstm2_w.shape[1]
    A = fc_w.shape[0]

    vmem = pl.BlockSpec(memory_space=pltpu.MemorySpace.VMEM)
    probs, hn, cn = pl.pallas_call(
        _net_kernel,
        out_shape=(jax.ShapeDtypeStruct((seq, A), jnp.float32),
                   jax.ShapeDtypeStruct((batch, H), jnp.float32),
                   jax.ShapeDtypeStruct((batch, H), jnp.float32)),
        in_specs=[vmem] * 6,
        out_specs=(vmem, vmem, vmem),
    )(state.astype(jnp.float32), h0[0].astype(jnp.float32), c0[0].astype(jnp.float32),
      lstm1_w.astype(jnp.float32), lstm2_w.astype(jnp.float32), fc_w.astype(jnp.float32))
    return probs, (hn[None], cn[None])


def net_forward_ref(state, hidden_state, lstm1_w, lstm2_w, fc_w):
    """Pure-JAX reference of the PyTorch forward (for a sanity check)."""
    h, c = hidden_state[0][0], hidden_state[1][0]
    H = lstm2_w.shape[1]
    outs = []
    for t in range(state.shape[0]):
        gates = state[t] @ lstm1_w.T + h @ lstm2_w.T
        i = jax.nn.sigmoid(gates[:, 0 * H:1 * H])
        f = jax.nn.sigmoid(gates[:, 1 * H:2 * H])
        g = jnp.tanh(gates[:, 2 * H:3 * H])
        o = jax.nn.sigmoid(gates[:, 3 * H:4 * H])
        c = f * c + i * g
        h = o * jnp.tanh(c)
        outs.append(h)
    x = jnp.stack(outs, axis=0)[:, -1]                    # (seq, H)
    logits = x @ fc_w.T
    return jax.nn.softmax(logits, axis=-1), (h[None], c[None])


if __name__ == "__main__":
    state_size = 8
    action_size = 4
    seq = FRAMES
    batch = 2
    # NOTE: at (seq=4, batch=2, H=32) this is overhead-bound on any TPU; the real
    # throughput lever is packing many independent agents into the batch dim.

    key = jax.random.PRNGKey(0)
    k1, k2, k3, k4, k5, k6 = jax.random.split(key, 6)
    # Parameter shapes match nn.LSTM(state_size, hidden, 1, bias=False) and
    # nn.Linear(hidden, action_size, bias=False).
    lstm1_w = 0.1 * jax.random.normal(k1, (4 * HIDDEN, state_size), jnp.float32)  # weight_ih_l0
    lstm2_w = 0.1 * jax.random.normal(k2, (4 * HIDDEN, HIDDEN), jnp.float32)      # weight_hh_l0
    fc_w = 0.1 * jax.random.normal(k3, (action_size, HIDDEN), jnp.float32)        # head.weight

    state = jax.random.normal(k4, (seq, batch, state_size), jnp.float32)
    h0 = jax.random.normal(k5, (LAYERS, batch, HIDDEN), jnp.float32)
    c0 = jax.random.normal(k6, (LAYERS, batch, HIDDEN), jnp.float32)

    probs, (hn, cn) = net_forward(state, (h0, c0), lstm1_w, lstm2_w, fc_w)
    jax.block_until_ready((probs, hn, cn))

    probs_r, (hn_r, cn_r) = net_forward_ref(state, (h0, c0), lstm1_w, lstm2_w, fc_w)
    assert jnp.allclose(probs, probs_r, atol=1e-4), "probs mismatch"
    assert jnp.allclose(hn, hn_r, atol=1e-4), "h_n mismatch"
    assert jnp.allclose(cn, cn_r, atol=1e-4), "c_n mismatch"

    print("KERNEL_OK")
</pallas_src>

<mosaic_0001>
module attributes {stable_mosaic.version = 11 : i64} {
  func.func @_net_kernel(%arg0: memref<4x2x8xf32, #tpu.memory_space<vmem>>, %arg1: memref<2x32xf32, #tpu.memory_space<vmem>>, %arg2: memref<2x32xf32, #tpu.memory_space<vmem>>, %arg3: memref<128x8xf32, #tpu.memory_space<vmem>>, %arg4: memref<128x32xf32, #tpu.memory_space<vmem>>, %arg5: memref<4x32xf32, #tpu.memory_space<vmem>>, %arg6: memref<4x4xf32, #tpu.memory_space<vmem>>, %arg7: memref<2x32xf32, #tpu.memory_space<vmem>>, %arg8: memref<2x32xf32, #tpu.memory_space<vmem>>) attributes {dimension_semantics = [], scalar_prefetch = 0 : i64, scratch_operands = 0 : i64, tpu.core_type = #tpu.core_type<tc>} {
    %c0 = arith.constant 0 : index
    %c0_0 = arith.constant 0 : index
    %c0_1 = arith.constant 0 : index
    %0 = vector.load %arg0[%c0, %c0_0, %c0_1] : memref<4x2x8xf32, #tpu.memory_space<vmem>>, vector<1x2x8xf32>
    %1 = vector.shape_cast %0 : vector<1x2x8xf32> to vector<2x8xf32>
    %c0_2 = arith.constant 0 : index
    %c0_3 = arith.constant 0 : index
    %2 = vector.load %arg3[%c0_2, %c0_3] : memref<128x8xf32, #tpu.memory_space<vmem>>, vector<128x8xf32>
    %cst = arith.constant dense<0.000000e+00> : vector<2x128xf32>
    %3 = tpu.matmul %1, %2, %cst {dimension_numbers = #tpu.dot_dimension_numbers<[1], [1], [0], [0], [0, 0, 1, 0], [], []>} : vector<2x8xf32>, vector<128x8xf32>, vector<2x128xf32> -> vector<2x128xf32>
    %c1 = arith.constant 1 : index
    %c0_4 = arith.constant 0 : index
    %c0_5 = arith.constant 0 : index
    %4 = vector.load %arg0[%c1, %c0_4, %c0_5] : memref<4x2x8xf32, #tpu.memory_space<vmem>>, vector<1x2x8xf32>
    %5 = vector.shape_cast %4 : vector<1x2x8xf32> to vector<2x8xf32>
    %c0_6 = arith.constant 0 : index
    %c0_7 = arith.constant 0 : index
    %6 = vector.load %arg3[%c0_6, %c0_7] : memref<128x8xf32, #tpu.memory_space<vmem>>, vector<128x8xf32>
    %cst_8 = arith.constant dense<0.000000e+00> : vector<2x128xf32>
    %7 = tpu.matmul %5, %6, %cst_8 {dimension_numbers = #tpu.dot_dimension_numbers<[1], [1], [0], [0], [0, 0, 1, 0], [], []>} : vector<2x8xf32>, vector<128x8xf32>, vector<2x128xf32> -> vector<2x128xf32>
    %c2 = arith.constant 2 : index
    %c0_9 = arith.constant 0 : index
    %c0_10 = arith.constant 0 : index
    %8 = vector.load %arg0[%c2, %c0_9, %c0_10] : memref<4x2x8xf32, #tpu.memory_space<vmem>>, vector<1x2x8xf32>
    %9 = vector.shape_cast %8 : vector<1x2x8xf32> to vector<2x8xf32>
    %c0_11 = arith.constant 0 : index
    %c0_12 = arith.constant 0 : index
    %10 = vector.load %arg3[%c0_11, %c0_12] : memref<128x8xf32, #tpu.memory_space<vmem>>, vector<128x8xf32>
    %cst_13 = arith.constant dense<0.000000e+00> : vector<2x128xf32>
    %11 = tpu.matmul %9, %10, %cst_13 {dimension_numbers = #tpu.dot_dimension_numbers<[1], [1], [0], [0], [0, 0, 1, 0], [], []>} : vector<2x8xf32>, vector<128x8xf32>, vector<2x128xf32> -> vector<2x128xf32>
    %c3 = arith.constant 3 : index
    %c0_14 = arith.constant 0 : index
    %c0_15 = arith.constant 0 : index
    %12 = vector.load %arg0[%c3, %c0_14, %c0_15] : memref<4x2x8xf32, #tpu.memory_space<vmem>>, vector<1x2x8xf32>
    %13 = vector.shape_cast %12 : vector<1x2x8xf32> to vector<2x8xf32>
    %c0_16 = arith.constant 0 : index
    %c0_17 = arith.constant 0 : index
    %14 = vector.load %arg3[%c0_16, %c0_17] : memref<128x8xf32, #tpu.memory_space<vmem>>, vector<128x8xf32>
    %cst_18 = arith.constant dense<0.000000e+00> : vector<2x128xf32>
    %15 = tpu.matmul %13, %14, %cst_18 {dimension_numbers = #tpu.dot_dimension_numbers<[1], [1], [0], [0], [0, 0, 1, 0], [], []>} : vector<2x8xf32>, vector<128x8xf32>, vector<2x128xf32> -> vector<2x128xf32>
    %c0_19 = arith.constant 0 : index
    %c0_20 = arith.constant 0 : index
    %16 = vector.load %arg1[%c0_19, %c0_20] : memref<2x32xf32, #tpu.memory_space<vmem>>, vector<2x32xf32>
    %c0_21 = arith.constant 0 : index
    %c0_22 = arith.constant 0 : index
    %17 = vector.load %arg2[%c0_21, %c0_22] : memref<2x32xf32, #tpu.memory_space<vmem>>, vector<2x32xf32>
    %c0_23 = arith.constant 0 : index
    %c0_24 = arith.constant 0 : index
    %18 = vector.load %arg4[%c0_23, %c0_24] : memref<128x32xf32, #tpu.memory_space<vmem>>, vector<128x32xf32>
    %cst_25 = arith.constant dense<0.000000e+00> : vector<2x128xf32>
    %19 = tpu.matmul %16, %18, %cst_25 {dimension_numbers = #tpu.dot_dimension_numbers<[1], [1], [0], [0], [0, 0, 1, 0], [], []>} : vector<2x32xf32>, vector<128x32xf32>, vector<2x128xf32> -> vector<2x128xf32>
    %20 = arith.addf %3, %19 : vector<2x128xf32>
    %21 = arith.negf %20 : vector<2x128xf32>
    %22 = math.exp %21 : vector<2x128xf32>
    %cst_26 = arith.constant 1.000000e+00 : f32
    %23 = vector.broadcast %cst_26 : f32 to vector<2x128xf32>
    %24 = arith.addf %23, %22 : vector<2x128xf32>
    %25 = arith.divf %23, %24 : vector<2x128xf32>
    %26 = math.tanh %20 : vector<2x128xf32>
    %27 = vector.extract_strided_slice %25 {offsets = [0, 0], sizes = [2, 32], strides = [1, 1]} : vector<2x128xf32> to vector<2x32xf32>
    %28 = vector.extract_strided_slice %25 {offsets = [0, 32], sizes = [2, 32], strides = [1, 1]} : vector<2x128xf32> to vector<2x32xf32>
    %29 = vector.extract_strided_slice %26 {offsets = [0, 64], sizes = [2, 32], strides = [1, 1]} : vector<2x128xf32> to vector<2x32xf32>
    %30 = vector.extract_strided_slice %25 {offsets = [0, 96], sizes = [2, 32], strides = [1, 1]} : vector<2x128xf32> to vector<2x32xf32>
    %31 = arith.mulf %28, %17 : vector<2x32xf32>
    %32 = arith.mulf %27, %29 : vector<2x32xf32>
    %33 = arith.addf %31, %32 : vector<2x32xf32>
    %34 = math.tanh %33 : vector<2x32xf32>
    %35 = arith.mulf %30, %34 : vector<2x32xf32>
    %36 = vector.extract_strided_slice %35 {offsets = [1, 0], sizes = [1, 32], strides = [1, 1]} : vector<2x32xf32> to vector<1x32xf32>
    %c0_27 = arith.constant 0 : index
    %c0_28 = arith.constant 0 : index
    %37 = vector.load %arg4[%c0_27, %c0_28] : memref<128x32xf32, #tpu.memory_space<vmem>>, vector<128x32xf32>
    %cst_29 = arith.constant dense<0.000000e+00> : vector<2x128xf32>
    %38 = tpu.matmul %35, %37, %cst_29 {dimension_numbers = #tpu.dot_dimension_numbers<[1], [1], [0], [0], [0, 0, 1, 0], [], []>} : vector<2x32xf32>, vector<128x32xf32>, vector<2x128xf32> -> vector<2x128xf32>
    %39 = arith.addf %7, %38 : vector<2x128xf32>
    %40 = arith.negf %39 : vector<2x128xf32>
    %41 = math.exp %40 : vector<2x128xf32>
    %cst_30 = arith.constant 1.000000e+00 : f32
    %42 = vector.broadcast %cst_30 : f32 to vector<2x128xf32>
    %43 = arith.addf %42, %41 : vector<2x128xf32>
    %44 = arith.divf %42, %43 : vector<2x128xf32>
    %45 = math.tanh %39 : vector<2x128xf32>
    %46 = vector.extract_strided_slice %44 {offsets = [0, 0], sizes = [2, 32], strides = [1, 1]} : vector<2x128xf32> to vector<2x32xf32>
    %47 = vector.extract_strided_slice %44 {offsets = [0, 32], sizes = [2, 32], strides = [1, 1]} : vector<2x128xf32> to vector<2x32xf32>
    %48 = vector.extract_strided_slice %45 {offsets = [0, 64], sizes = [2, 32], strides = [1, 1]} : vector<2x128xf32> to vector<2x32xf32>
    %49 = vector.extract_strided_slice %44 {offsets = [0, 96], sizes = [2, 32], strides = [1, 1]} : vector<2x128xf32> to vector<2x32xf32>
    %50 = arith.mulf %47, %33 : vector<2x32xf32>
    %51 = arith.mulf %46, %48 : vector<2x32xf32>
    %52 = arith.addf %50, %51 : vector<2x32xf32>
    %53 = math.tanh %52 : vector<2x32xf32>
    %54 = arith.mulf %49, %53 : vector<2x32xf32>
    %55 = vector.extract_strided_slice %54 {offsets = [1, 0], sizes = [1, 32], strides = [1, 1]} : vector<2x32xf32> to vector<1x32xf32>
    %c0_31 = arith.constant 0 : index
    %c0_32 = arith.constant 0 : index
    %56 = vector.load %arg4[%c0_31, %c0_32] : memref<128x32xf32, #tpu.memory_space<vmem>>, vector<128x32xf32>
    %cst_33 = arith.constant dense<0.000000e+00> : vector<2x128xf32>
    %57 = tpu.matmul %54, %56, %cst_33 {dimension_numbers = #tpu.dot_dimension_numbers<[1], [1], [0], [0], [0, 0, 1, 0], [], []>} : vector<2x32xf32>, vector<128x32xf32>, vector<2x128xf32> -> vector<2x128xf32>
    %58 = arith.addf %11, %57 : vector<2x128xf32>
    %59 = arith.negf %58 : vector<2x128xf32>
    %60 = math.exp %59 : vector<2x128xf32>
    %cst_34 = arith.constant 1.000000e+00 : f32
    %61 = vector.broadcast %cst_34 : f32 to vector<2x128xf32>
    %62 = arith.addf %61, %60 : vector<2x128xf32>
    %63 = arith.divf %61, %62 : vector<2x128xf32>
    %64 = math.tanh %58 : vector<2x128xf32>
    %65 = vector.extract_strided_slice %63 {offsets = [0, 0], sizes = [2, 32], strides = [1, 1]} : vector<2x128xf32> to vector<2x32xf32>
    %66 = vector.extract_strided_slice %63 {offsets = [0, 32], sizes = [2, 32], strides = [1, 1]} : vector<2x128xf32> to vector<2x32xf32>
    %67 = vector.extract_strided_slice %64 {offsets = [0, 64], sizes = [2, 32], strides = [1, 1]} : vector<2x128xf32> to vector<2x32xf32>
    %68 = vector.extract_strided_slice %63 {offsets = [0, 96], sizes = [2, 32], strides = [1, 1]} : vector<2x128xf32> to vector<2x32xf32>
    %69 = arith.mulf %66, %52 : vector<2x32xf32>
    %70 = arith.mulf %65, %67 : vector<2x32xf32>
    %71 = arith.addf %69, %70 : vector<2x32xf32>
    %72 = math.tanh %71 : vector<2x32xf32>
    %73 = arith.mulf %68, %72 : vector<2x32xf32>
    %74 = vector.extract_strided_slice %73 {offsets = [1, 0], sizes = [1, 32], strides = [1, 1]} : vector<2x32xf32> to vector<1x32xf32>
    %c0_35 = arith.constant 0 : index
    %c0_36 = arith.constant 0 : index
    %75 = vector.load %arg4[%c0_35, %c0_36] : memref<128x32xf32, #tpu.memory_space<vmem>>, vector<128x32xf32>
    %cst_37 = arith.constant dense<0.000000e+00> : vector<2x128xf32>
    %76 = tpu.matmul %73, %75, %cst_37 {dimension_numbers = #tpu.dot_dimension_numbers<[1], [1], [0], [0], [0, 0, 1, 0], [], []>} : vector<2x32xf32>, vector<128x32xf32>, vector<2x128xf32> -> vector<2x128xf32>
    %77 = arith.addf %15, %76 : vector<2x128xf32>
    %78 = arith.negf %77 : vector<2x128xf32>
    %79 = math.exp %78 : vector<2x128xf32>
    %cst_38 = arith.constant 1.000000e+00 : f32
    %80 = vector.broadcast %cst_38 : f32 to vector<2x128xf32>
    %81 = arith.addf %80, %79 : vector<2x128xf32>
    %82 = arith.divf %80, %81 : vector<2x128xf32>
    %83 = math.tanh %77 : vector<2x128xf32>
    %84 = vector.extract_strided_slice %82 {offsets = [0, 0], sizes = [2, 32], strides = [1, 1]} : vector<2x128xf32> to vector<2x32xf32>
    %85 = vector.extract_strided_slice %82 {offsets = [0, 32], sizes = [2, 32], strides = [1, 1]} : vector<2x128xf32> to vector<2x32xf32>
    %86 = vector.extract_strided_slice %83 {offsets = [0, 64], sizes = [2, 32], strides = [1, 1]} : vector<2x128xf32> to vector<2x32xf32>
    %87 = vector.extract_strided_slice %82 {offsets = [0, 96], sizes = [2, 32], strides = [1, 1]} : vector<2x128xf32> to vector<2x32xf32>
    %88 = arith.mulf %85, %71 : vector<2x32xf32>
    %89 = arith.mulf %84, %86 : vector<2x32xf32>
    %90 = arith.addf %88, %89 : vector<2x32xf32>
    %91 = math.tanh %90 : vector<2x32xf32>
    %92 = arith.mulf %87, %91 : vector<2x32xf32>
    %93 = vector.extract_strided_slice %92 {offsets = [1, 0], sizes = [1, 32], strides = [1, 1]} : vector<2x32xf32> to vector<1x32xf32>
    %c0_39 = arith.constant 0 : index
    %c0_40 = arith.constant 0 : index
    %94 = vector.load %arg7[%c0_39, %c0_40] : memref<2x32xf32, #tpu.memory_space<vmem>>, vector<2x32xf32>
    tpu.vector_store %arg7[%c0_39, %c0_40], %92 {strides = array<i32>} : memref<2x32xf32, #tpu.memory_space<vmem>>, vector<2x32xf32>,
    %c0_41 = arith.constant 0 : index
    %c0_42 = arith.constant 0 : index
    %95 = vector.load %arg8[%c0_41, %c0_42] : memref<2x32xf32, #tpu.memory_space<vmem>>, vector<2x32xf32>
    tpu.vector_store %arg8[%c0_41, %c0_42], %90 {strides = array<i32>} : memref<2x32xf32, #tpu.memory_space<vmem>>, vector<2x32xf32>,
    %96 = tpu.concatenate %36, %55, %74, %93 in 0 : vector<1x32xf32>, vector<1x32xf32>, vector<1x32xf32>, vector<1x32xf32> -> vector<4x32xf32>
    %c0_43 = arith.constant 0 : index
    %c0_44 = arith.constant 0 : index
    %97 = vector.load %arg5[%c0_43, %c0_44] : memref<4x32xf32, #tpu.memory_space<vmem>>, vector<4x32xf32>
    %cst_45 = arith.constant dense<0.000000e+00> : vector<4x4xf32>
    %98 = tpu.matmul %96, %97, %cst_45 {dimension_numbers = #tpu.dot_dimension_numbers<[1], [1], [0], [0], [0, 0, 1, 0], [], []>} : vector<4x32xf32>, vector<4x32xf32>, vector<4x4xf32> -> vector<4x4xf32>
    %cst_46 = arith.constant dense<0xFF800000> : vector<4xf32>
    %99 = vector.multi_reduction <maximumf>, %98, %cst_46 [1] : vector<4x4xf32> to vector<4xf32>
    %100 = vector.shape_cast %99 : vector<4xf32> to vector<4x1xf32>
    %101 = vector.broadcast %100 : vector<4x1xf32> to vector<4x4xf32>
    %102 = arith.subf %98, %101 : vector<4x4xf32>
    %103 = math.exp %102 : vector<4x4xf32>
    %cst_47 = arith.constant dense<0.000000e+00> : vector<4xf32>
    %104 = vector.multi_reduction <add>, %103, %cst_47 [1] : vector<4x4xf32> to vector<4xf32>
    %105 = vector.shape_cast %104 : vector<4xf32> to vector<4x1xf32>
    %106 = vector.broadcast %105 : vector<4x1xf32> to vector<4x4xf32>
    %107 = arith.divf %103, %106 : vector<4x4xf32>
    %c0_48 = arith.constant 0 : index
    %c0_49 = arith.constant 0 : index
    %108 = vector.load %arg6[%c0_48, %c0_49] : memref<4x4xf32, #tpu.memory_space<vmem>>, vector<4x4xf32>
    tpu.vector_store %arg6[%c0_48, %c0_49], %107 {strides = array<i32>} : memref<4x4xf32, #tpu.memory_space<vmem>>, vector<4x4xf32>,
    return
  }
}

</mosaic_0001>

<bundles_post_ra>
// kernel: tpu_custom_call.1
= control target key start
LH: loop header
LB: loop body
LE: loop exit
PB: predicated region body
PF: predicated region fallthrough
CT: control target
= control target key end

     0   :  { %14 = vsyncpa [#allocation3], 0  ;;  %vm69_vm0 = vcmask 261120   ;;  %vm191_vm1 = vcmask 64512   ;;  %v1689_v2 = vmov 0.0   ;;  %vm1690_vm2 = vmmov 0   ;;  %s2383_s0 = inlined_call_operand.vmem [shape: f32[4,2,8], index: 0, kind: input, shape index: {}]   ;;  %s2384_s1 = inlined_call_operand.vmem [shape: f32[2,32], index: 1, kind: input, shape index: {}]   ;;  %s2385_s2 = inlined_call_operand.vmem [shape: f32[2,32], index: 2, kind: input, shape index: {}]   ;;  %s2386_s3 = inlined_call_operand.vmem [shape: f32[128,8], index: 3, kind: input, shape index: {}]   ;;  %s2387_s4 = inlined_call_operand.vmem [shape: f32[128,32], index: 4, kind: input, shape index: {}]   ;;  %s2388_s5 = inlined_call_operand.vmem [shape: f32[4,32], index: 5, kind: input, shape index: {}]   ;;  %s2389_s6 = inlined_call_operand.hbm [shape: f32[4,4], index: 6, kind: output, shape index: {0}]   ;;  %s2390_s7 = inlined_call_operand.hbm [shape: f32[2,32], index: 7, kind: output, shape index: {1}]   ;;  %s2391_s8 = inlined_call_operand.hbm [shape: f32[2,32], index: 8, kind: output, shape index: {2}]  }
   0x1   :  { %v1745_v0 = vld [vmem:[%s2387_s4 + $0x78] sm:$0xff]  ;;  %1296 = vmatprep.subr.mxu0 %v1689_v2  ;;  %1331 = vmatprep.subr.mxu1 %v1689_v2  ;;  %v1763_v3 = vld [vmem:[%s2387_s4 + $0x70] sm:$0xff]  ;;  %v1783_v5 = vld [vmem:[%s2387_s4 + $0x68] sm:$0xff] }
   0x2   :  { %v1750_v1 = vld [vmem:[%s2386_s3 + $0x78] sm:$0xff]  ;;  %1297 = vmatpush3.xpose.msk.msra.mxu0 %vm69_vm0, %v1745_v0  ;;  %v1768_v4 = vld [vmem:[%s2386_s3 + $0x70] sm:$0xff]  ;;  %1328 = vmatprep.mubr.msk.f32.mxu0 %vm1690_vm2, %v1689_v2  ;;  %v1788_v6 = vld [vmem:[%s2386_s3 + $0x68] sm:$0xff] }
   0x3   :  { %1332 = vmatpush3.xpose.msk.msra.mxu1 %vm191_vm1, %v1750_v1  ;;  %1298 = vmatprep.subr.mxu0 %v1689_v2  ;;  %v1799_v7 = vld [vmem:[%s2387_s4 + $0x60] sm:$0xff] }
   0x4   :  { %1333 = vmatprep.subr.mxu1 %v1689_v2  ;;  %1363 = vmatprep.mubr.msk.f32.mxu1 %vm1690_vm2, %v1689_v2  ;;  %v1804_v8 = vld [vmem:[%s2386_s3 + $0x60] sm:$0xff] }
   0x6   :  { %1299 = vmatpush3.xpose.msk.msra.mxu0 %vm69_vm0, %v1763_v3 }
   0x7   :  { %1334 = vmatpush3.xpose.msk.msra.mxu1 %vm191_vm1, %v1768_v4  ;;  %1300 = vmatprep.subr.mxu0 %v1689_v2 }
   0x8   :  { %1335 = vmatprep.subr.mxu1 %v1689_v2 }
   0xa   :  { %1301 = vmatpush3.xpose.msk.msra.mxu0 %vm69_vm0, %v1783_v5 }
   0xb   :  { %1336 = vmatpush3.xpose.msk.msra.mxu1 %vm191_vm1, %v1788_v6  ;;  %1302 = vmatprep.subr.mxu0 %v1689_v2 }
   0xc   :  { %1337 = vmatprep.subr.mxu1 %v1689_v2 }
   0xd   :  { %15 = vsyncpa [#allocation5], 0  ;;  %v1815_v9 = vld [vmem:[%s2387_s4 + $0x58] sm:$0xff]  ;;  %v1831_v11 = vld [vmem:[%s2387_s4 + $0x50] sm:$0xff]  ;;  %s1692_s29 = smov 32   ;;  %vm874_vm3 = vcmask 1040384  }
   0xe   :  { %1303 = vmatpush3.xpose.msk.msra.mxu0 %vm69_vm0, %v1799_v7  ;;  %v1820_v10 = vld [vmem:[%s2386_s3 + $0x58] sm:$0xff]  ;;  %v1836_v12 = vld [vmem:[%s2386_s3 + $0x50] sm:$0xff]  ;;  %v1847_v13 = vld [vmem:[%s2387_s4 + $0x48] sm:$0xff]  ;;  %vm876_vm4 = vcmask 1041408   ;;  %vm878_vm5 = vcmask 1042432   ;;  %vm959_vm6 = vcmask 27648  }
   0xf   :  { %1338 = vmatpush3.xpose.msk.msra.mxu1 %vm191_vm1, %v1804_v8  ;;  %1304 = vmatprep.subr.mxu0 %v1689_v2  ;;  %v1852_v14 = vld [vmem:[%s2386_s3 + $0x48] sm:$0xff]  ;;  %v1863_v15 = vld [vmem:[%s2387_s4 + $0x40] sm:$0xff]  ;;  %v1879_v17 = vld [vmem:[%s2387_s4 + $0x38] sm:$0xff]  ;;  %vm861_vm7 = vcmask 254976   ;;  %s1694_s14 = smov [#allocation4]   ;;  %s1695_s16 = smov [#allocation6]  }
  0x10   :  { %1339 = vmatprep.subr.mxu1 %v1689_v2  ;;  %v1868_v16 = vld [vmem:[%s2386_s3 + $0x40] sm:$0xff]  ;;  %v1884_v18 = vld [vmem:[%s2386_s3 + $0x38] sm:$0xff]  ;;  %v1895_v19 = vld [vmem:[%s2387_s4 + $0x30] sm:$0xff]  ;;  %s988_s15 = sshll.u32 %s1694_s14, 4  ;;  %s998_s17 = sshll.u32 %s1695_s16, 4  ;;  %s989_s15 = int_to_ptr.vmem [resolvable:$true] %s988_s15  ;;  %s999_s17 = int_to_ptr.vmem [resolvable:$true] %s998_s17 }
  0x11   :  { %v1900_v20 = vld [vmem:[%s2386_s3 + $0x30] sm:$0xff]  ;;  %v1911_v21 = vld [vmem:[%s2387_s4 + $0x28] sm:$0xff]  ;;  %v1927_v23 = vld [vmem:[%s2387_s4 + $0x20] sm:$0xff]  ;;  %s1625_s18 = scalar_lea.vmem %s989_s15, 32  ;;  %p1630_p1 = scmp.lt.s32.totalorder %s989_s15, %s989_s15 }
  0x12   :  { %1305 = vmatpush3.xpose.msk.msra.mxu0 %vm69_vm0, %v1815_v9  ;;  %v1916_v22 = vld [vmem:[%s2386_s3 + $0x28] sm:$0xff]  ;;  %v1932_v24 = vld [vmem:[%s2386_s3 + $0x20] sm:$0xff]  ;;  %v1943_v25 = vld [vmem:[%s2387_s4 + $0x18] sm:$0xff]  ;;  %p1626_p0 = scmp.ne.s32.totalorder %s989_s15, %s1625_s18  ;;  %p1631_p2 = scmp.lt.s32.totalorder %s1625_s18, %s1625_s18 }
  0x13   :  { %1340 = vmatpush3.xpose.msk.msra.mxu1 %vm191_vm1, %v1820_v10  ;;  %1306 = vmatprep.subr.mxu0 %v1689_v2  ;;  %v1948_v26 = vld [vmem:[%s2386_s3 + $0x18] sm:$0xff]  ;;  %v1959_v27 = vld [vmem:[%s2387_s4 + $0x10] sm:$0xff]  ;;  %v1975_v29 = vld [vmem:[%s2387_s4 + $0x8] sm:$0xff] }
  0x14   :  { %1341 = vmatprep.subr.mxu1 %v1689_v2  ;;  %v1964_v28 = vld [vmem:[%s2386_s3 + $0x10] sm:$0xff]  ;;  %v1980_v30 = vld [vmem:[%s2386_s3 + $0x8] sm:$0xff]  ;;  %v1991_v31 = vld [vmem:[%s2387_s4] sm:$0xff]  ;;  %p1632_p3 = por %p1631_p2, %p1630_p1 }
  0x15   :  { %v1996_v32 = vld [vmem:[%s2386_s3] sm:$0xff] }
  0x16   :  { %1307 = vmatpush3.xpose.msk.msra.mxu0 %vm69_vm0, %v1831_v11  ;;  %v51_v33 = vld [vmem:[%s2384_s1] sm:$0x3]  ;;  %s1691_s1 = smov 64   ;;  %v1013_v52 = vld [vmem:[%s2383_s0 + $0x2] sm:$0x3]  ;;  %p1633_p4 = pnand %p1632_p3, %p1626_p0 }
  0x17   :  { %1342 = vmatpush3.xpose.msk.msra.mxu1 %vm191_vm1, %v1836_v12  ;;  %1308 = vmatprep.subr.mxu0 %v1689_v2  ;;  %v28_v34 = vld [vmem:[%s2383_s0] sm:$0x3] }
  0x18   :  { %1343 = vmatprep.subr.mxu1 %v1689_v2  ;;  %v52_v41 = vld [vmem:[%s2385_s2] sm:$0x3] }
  0x1a   :  { %1309 = vmatpush3.xpose.msk.msra.mxu0 %vm69_vm0, %v1847_v13 }
  0x1b   :  { %1344 = vmatpush3.xpose.msk.msra.mxu1 %vm191_vm1, %v1852_v14  ;;  %1310 = vmatprep.subr.mxu0 %v1689_v2 }
  0x1c   :  { %1345 = vmatprep.subr.mxu1 %v1689_v2 }
  0x1e   :  { %1311 = vmatpush3.xpose.msk.msra.mxu0 %vm69_vm0, %v1863_v15 }
  0x1f   :  { %1346 = vmatpush3.xpose.msk.msra.mxu1 %vm191_vm1, %v1868_v16  ;;  %1312 = vmatprep.subr.mxu0 %v1689_v2 }
  0x20   :  { %1347 = vmatprep.subr.mxu1 %v1689_v2 }
  0x22   :  { %1313 = vmatpush3.xpose.msk.msra.mxu0 %vm69_vm0, %v1879_v17 }
  0x23   :  { %1348 = vmatpush3.xpose.msk.msra.mxu1 %vm191_vm1, %v1884_v18  ;;  %1314 = vmatprep.subr.mxu0 %v1689_v2 }
  0x24   :  { %1349 = vmatprep.subr.mxu1 %v1689_v2 }
  0x26   :  { %1315 = vmatpush3.xpose.msk.msra.mxu0 %vm69_vm0, %v1895_v19 }
  0x27   :  { %1350 = vmatpush3.xpose.msk.msra.mxu1 %vm191_vm1, %v1900_v20  ;;  %1316 = vmatprep.subr.mxu0 %v1689_v2 }
  0x28   :  { %1351 = vmatprep.subr.mxu1 %v1689_v2 }
  0x2a   :  { %1317 = vmatpush3.xpose.msk.msra.mxu0 %vm69_vm0, %v1911_v21 }
  0x2b   :  { %1352 = vmatpush3.xpose.msk.msra.mxu1 %vm191_vm1, %v1916_v22  ;;  %1318 = vmatprep.subr.mxu0 %v1689_v2 }
  0x2c   :  { %1353 = vmatprep.subr.mxu1 %v1689_v2 }
  0x2e   :  { %1319 = vmatpush3.xpose.msk.msra.mxu0 %vm69_vm0, %v1927_v23 }
  0x2f   :  { %1354 = vmatpush3.xpose.msk.msra.mxu1 %vm191_vm1, %v1932_v24  ;;  %1320 = vmatprep.subr.mxu0 %v1689_v2 }
  0x30   :  { %1355 = vmatprep.subr.mxu1 %v1689_v2 }
  0x32   :  { %1321 = vmatpush3.xpose.msk.msra.mxu0 %vm69_vm0, %v1943_v25 }
  0x33   :  { %1356 = vmatpush3.xpose.msk.msra.mxu1 %vm191_vm1, %v1948_v26  ;;  %1322 = vmatprep.subr.mxu0 %v1689_v2 }
  0x34   :  { %1357 = vmatprep.subr.mxu1 %v1689_v2 }
  0x36   :  { %1323 = vmatpush3.xpose.msk.msra.mxu0 %vm69_vm0, %v1959_v27 }
  0x37   :  { %1358 = vmatpush3.xpose.msk.msra.mxu1 %vm191_vm1, %v1964_v28  ;;  %1324 = vmatprep.subr.mxu0 %v1689_v2 }
  0x38   :  { %1359 = vmatprep.subr.mxu1 %v1689_v2 }
  0x3a   :  { %1325 = vmatpush3.xpose.msk.msra.mxu0 %vm69_vm0, %v1975_v29 }
  0x3b   :  { %1360 = vmatpush3.xpose.msk.msra.mxu1 %vm191_vm1, %v1980_v30  ;;  %1326 = vmatprep.subr.mxu0 %v1689_v2 }
  0x3c   :  { %1361 = vmatprep.subr.mxu1 %v1689_v2 }
  0x3e   :  { %1327 = vmatpush3.xpose.msk.msra.mxu0 %vm69_vm0, %v1991_v31 }
  0x3f   :  { %1362 = vmatpush3.xpose.msk.msra.mxu1 %vm191_vm1, %v1996_v32  ;;  %1366 = vmatprep.subr.mxu0 %v1689_v2 }
  0x40   :  { %1401 = vmatprep.subr.mxu1 %v1689_v2 }
  0x41   :  { %1329 = vmatmul.mubr.msk.f32.vlgmr.msra.gmra.mxu0 %vm69_vm0, %v51_v33 }
  0x42   :  { %1364 = vmatmul.mubr.msk.f32.vlgmr.msra.gmra.mxu1 %vm191_vm1, %v28_v34  ;;  %1367 = vmatpush3.xpose.msk.msra.mxu0 %vm69_vm0, %v1745_v0 }
  0x43   :  { %1402 = vmatpush3.xpose.msk.msra.mxu1 %vm191_vm1, %v1750_v1  ;;  %1368 = vmatprep.subr.mxu0 %v1689_v2 }
  0x44   :  { %1403 = vmatprep.subr.mxu1 %v1689_v2  ;;  %1433 = vmatprep.mubr.msk.f32.mxu1 %vm1690_vm2, %v1689_v2 }
  0x45   :  { %1398 = vmatprep.mubr.msk.f32.mxu0 %vm1690_vm2, %v1689_v2 }
  0x46   :  { %1369 = vmatpush3.xpose.msk.msra.mxu0 %vm69_vm0, %v1763_v3 }
  0x47   :  { %1404 = vmatpush3.xpose.msk.msra.mxu1 %vm191_vm1, %v1768_v4  ;;  %1370 = vmatprep.subr.mxu0 %v1689_v2 }
  0x48   :  { %1405 = vmatprep.subr.mxu1 %v1689_v2 }
  0x4a   :  { %1371 = vmatpush3.xpose.msk.msra.mxu0 %vm69_vm0, %v1783_v5 }
  0x4b   :  { %1406 = vmatpush3.xpose.msk.msra.mxu1 %vm191_vm1, %v1788_v6  ;;  %1372 = vmatprep.subr.mxu0 %v1689_v2 }
  0x4c   :  { %1407 = vmatprep.subr.mxu1 %v1689_v2 }
  0x4e   :  { %1373 = vmatpush3.xpose.msk.msra.mxu0 %vm69_vm0, %v1799_v7 }
  0x4f   :  { %1408 = vmatpush3.xpose.msk.msra.mxu1 %vm191_vm1, %v1804_v8  ;;  %1374 = vmatprep.subr.mxu0 %v1689_v2 }
  0x50   :  { %1409 = vmatprep.subr.mxu1 %v1689_v2 }
  0x52   :  { %1375 = vmatpush3.xpose.msk.msra.mxu0 %vm69_vm0, %v1815_v9 }
  0x53   :  { %1410 = vmatpush3.xpose.msk.msra.mxu1 %vm191_vm1, %v1820_v10  ;;  %1376 = vmatprep.subr.mxu0 %v1689_v2 }
  0x54   :  { %1411 = vmatprep.subr.mxu1 %v1689_v2 }
  0x56   :  { %1377 = vmatpush3.xpose.msk.msra.mxu0 %vm69_vm0, %v1831_v11 }
  0x57   :  { %1412 = vmatpush3.xpose.msk.msra.mxu1 %vm191_vm1, %v1836_v12  ;;  %1378 = vmatprep.subr.mxu0 %v1689_v2 }
  0x58   :  { %1413 = vmatprep.subr.mxu1 %v1689_v2 }
  0x5a   :  { %1379 = vmatpush3.xpose.msk.msra.mxu0 %vm69_vm0, %v1847_v13 }
  0x5b   :  { %1414 = vmatpush3.xpose.msk.msra.mxu1 %vm191_vm1, %v1852_v14  ;;  %1380 = vmatprep.subr.mxu0 %v1689_v2 }
  0x5c   :  { %1415 = vmatprep.subr.mxu1 %v1689_v2 }
  0x5e   :  { %1381 = vmatpush3.xpose.msk.msra.mxu0 %vm69_vm0, %v1863_v15 }
  0x5f   :  { %1416 = vmatpush3.xpose.msk.msra.mxu1 %vm191_vm1, %v1868_v16  ;;  %1382 = vmatprep.subr.mxu0 %v1689_v2 }
  0x60   :  { %1417 = vmatprep.subr.mxu1 %v1689_v2 }
  0x62   :  { %1383 = vmatpush3.xpose.msk.msra.mxu0 %vm69_vm0, %v1879_v17 }
  0x63   :  { %1418 = vmatpush3.xpose.msk.msra.mxu1 %vm191_vm1, %v1884_v18  ;;  %1384 = vmatprep.subr.mxu0 %v1689_v2 }
  0x64   :  { %1419 = vmatprep.subr.mxu1 %v1689_v2 }
  0x66   :  { %1385 = vmatpush3.xpose.msk.msra.mxu0 %vm69_vm0, %v1895_v19 }
  0x67   :  { %1420 = vmatpush3.xpose.msk.msra.mxu1 %vm191_vm1, %v1900_v20  ;;  %1386 = vmatprep.subr.mxu0 %v1689_v2 }
  0x68   :  { %1421 = vmatprep.subr.mxu1 %v1689_v2 }
  0x6a   :  { %1387 = vmatpush3.xpose.msk.msra.mxu0 %vm69_vm0, %v1911_v21 }
  0x6b   :  { %1422 = vmatpush3.xpose.msk.msra.mxu1 %vm191_vm1, %v1916_v22  ;;  %1388 = vmatprep.subr.mxu0 %v1689_v2 }
  0x6c   :  { %1423 = vmatprep.subr.mxu1 %v1689_v2 }
  0x6e   :  { %1389 = vmatpush3.xpose.msk.msra.mxu0 %vm69_vm0, %v1927_v23 }
  0x6f   :  { %1424 = vmatpush3.xpose.msk.msra.mxu1 %vm191_vm1, %v1932_v24  ;;  %1390 = vmatprep.subr.mxu0 %v1689_v2 }
  0x70   :  { %1425 = vmatprep.subr.mxu1 %v1689_v2 }
  0x72   :  { %1391 = vmatpush3.xpose.msk.msra.mxu0 %vm69_vm0, %v1943_v25 }
  0x73   :  { %1426 = vmatpush3.xpose.msk.msra.mxu1 %vm191_vm1, %v1948_v26  ;;  %1392 = vmatprep.subr.mxu0 %v1689_v2 }
  0x74   :  { %1427 = vmatprep.subr.mxu1 %v1689_v2 }
  0x76   :  { %1393 = vmatpush3.xpose.msk.msra.mxu0 %vm69_vm0, %v1959_v27 }
  0x77   :  { %1428 = vmatpush3.xpose.msk.msra.mxu1 %vm191_vm1, %v1964_v28  ;;  %1394 = vmatprep.subr.mxu0 %v1689_v2 }
  0x78   :  { %1429 = vmatprep.subr.mxu1 %v1689_v2 }
  0x7a   :  { %1395 = vmatpush3.xpose.msk.msra.mxu0 %vm69_vm0, %v1975_v29 }
  0x7b   :  { %1430 = vmatpush3.xpose.msk.msra.mxu1 %vm191_vm1, %v1980_v30  ;;  %1396 = vmatprep.subr.mxu0 %v1689_v2 }
  0x7c   :  { %1431 = vmatprep.subr.mxu1 %v1689_v2 }
  0x7e   :  { %1397 = vmatpush3.xpose.msk.msra.mxu0 %vm69_vm0, %v1991_v31 }
  0x7f   :  { %1432 = vmatpush3.xpose.msk.msra.mxu1 %vm191_vm1, %v1996_v32  ;;  %1436 = vmatprep.subr.mxu0 %v1689_v2 }
  0x80   :  { %1471 = vmatprep.subr.mxu1 %v1689_v2 }
  0x82   :  { %1434 = vmatmul.mubr.msk.f32.vlgmr.msra.gmra.mxu1 %vm191_vm1, %v1013_v52  ;;  %v880_v52 = vld [vmem:[%s2388_s5] sm:$0xf]  ;;  %s1693_s5 = smov 96  }
  0x83   :  { %1472 = vmatpush3.xpose.msk.msra.mxu1 %vm191_vm1, %v1750_v1  ;;  %1503 = vmatprep.mubr.msk.f32.mxu1 %vm1690_vm2, %v1689_v2 }
  0x84   :  { %1473 = vmatprep.subr.mxu1 %v1689_v2 }
  0x87   :  { %1474 = vmatpush3.xpose.msk.msra.mxu1 %vm191_vm1, %v1768_v4 }
  0x88   :  { %1475 = vmatprep.subr.mxu1 %v1689_v2 }
  0x8b   :  { %1476 = vmatpush3.xpose.msk.msra.mxu1 %vm191_vm1, %v1788_v6 }
  0x8c   :  { %1477 = vmatprep.subr.mxu1 %v1689_v2 }
  0x8f   :  { %1478 = vmatpush3.xpose.msk.msra.mxu1 %vm191_vm1, %v1804_v8 }
  0x90   :  { %1479 = vmatprep.subr.mxu1 %v1689_v2 }
  0x93   :  { %1480 = vmatpush3.xpose.msk.msra.mxu1 %vm191_vm1, %v1820_v10 }
  0x94   :  { %1481 = vmatprep.subr.mxu1 %v1689_v2 }
  0x97   :  { %1482 = vmatpush3.xpose.msk.msra.mxu1 %vm191_vm1, %v1836_v12 }
  0x98   :  { %1483 = vmatprep.subr.mxu1 %v1689_v2 }
  0x9b   :  { %1484 = vmatpush3.xpose.msk.msra.mxu1 %vm191_vm1, %v1852_v14 }
  0x9c   :  { %1485 = vmatprep.subr.mxu1 %v1689_v2 }
  0x9f   :  { %1486 = vmatpush3.xpose.msk.msra.mxu1 %vm191_vm1, %v1868_v16 }
  0xa0   :  { %1487 = vmatprep.subr.mxu1 %v1689_v2 }
  0xa3   :  { %1488 = vmatpush3.xpose.msk.msra.mxu1 %vm191_vm1, %v1884_v18 }
  0xa4   :  { %1489 = vmatprep.subr.mxu1 %v1689_v2 }
  0xa7   :  { %1490 = vmatpush3.xpose.msk.msra.mxu1 %vm191_vm1, %v1900_v20 }
  0xa8   :  { %1491 = vmatprep.subr.mxu1 %v1689_v2 }
  0xab   :  { %1492 = vmatpush3.xpose.msk.msra.mxu1 %vm191_vm1, %v1916_v22 }
  0xac   :  { %1493 = vmatprep.subr.mxu1 %v1689_v2 }
  0xaf   :  { %1494 = vmatpush3.xpose.msk.msra.mxu1 %vm191_vm1, %v1932_v24 }
  0xb0   :  { %1495 = vmatprep.subr.mxu1 %v1689_v2 }
  0xb3   :  { %1496 = vmatpush3.xpose.msk.msra.mxu1 %vm191_vm1, %v1948_v26 }
  0xb4   :  { %1497 = vmatprep.subr.mxu1 %v1689_v2 }
  0xb7   :  { %1498 = vmatpush3.xpose.msk.msra.mxu1 %vm191_vm1, %v1964_v28 }
  0xb8   :  { %1499 = vmatprep.subr.mxu1 %v1689_v2 }
  0xbb   :  { %1500 = vmatpush3.xpose.msk.msra.mxu1 %vm191_vm1, %v1980_v30 }
  0xbc   :  { %1501 = vmatprep.subr.mxu1 %v1689_v2 }
  0xbf   :  { %1502 = vmatpush3.xpose.msk.msra.mxu1 %vm191_vm1, %v1996_v32 }
  0xc0   :  { %1541 = vmatprep.subr.mxu1 %v1689_v2 }
 0x101   :  { %v187_v35 = vpop.f32.mrf.mxu0 }
 0x102   :  { %v309_v36 = vpop.f32.mrf.mxu1 }
 0x103   :  { %v310_v37 = vadd.f32 %v309_v36, %v187_v35  ;;  %v1330_v38 = vpop.f32.mrf.mxu0 }
 0x104   :  { %v1365_v39 = vpop.f32.mrf.mxu1 }
 0x105   :  { %1589 = vtanh.f32 %v310_v37  ;;  %v1050_v42 = vmul.f32 -1.442695, %v310_v37 }
 0x107   :  { %1591 = vpow2.f32 %v1050_v42 }
 0x112   :  { %v1590_v40 = vpop.eup %1589 }
 0x113   :  { %326 = vrot.lane.b32.xlu0 %v1590_v40, %s1691_s1 }
 0x114   :  { %v1592_v43 = vpop.eup %1591 }
 0x115   :  { %v316_v44 = vadd.f32 1.0, %v1592_v43 }
 0x117   :  { %321 = vrot.lane.b32.xlu0 %v52_v41, %s1692_s29  ;;  %1593 = vrcp.f32 %v316_v44  ;;  %v1014_v41 = vld [vmem:[%s2383_s0 + $0x4] sm:$0x3] }
 0x118   :  { %1504 = vmatmul.mubr.msk.f32.vlgmr.msra.gmra.mxu1 %vm191_vm1, %v1014_v41 }
 0x119   :  { %1542 = vmatpush3.xpose.msk.msra.mxu1 %vm191_vm1, %v1750_v1  ;;  %1573 = vmatprep.mubr.msk.f32.mxu1 %vm1690_vm2, %v1689_v2 }
 0x11a   :  { %1543 = vmatprep.subr.mxu1 %v1689_v2 }
 0x11d   :  { %1544 = vmatpush3.xpose.msk.msra.mxu1 %vm191_vm1, %v1768_v4 }
 0x11e   :  { %1545 = vmatprep.subr.mxu1 %v1689_v2 }
 0x121   :  { %1546 = vmatpush3.xpose.msk.msra.mxu1 %vm191_vm1, %v1788_v6 }
 0x122   :  { %1547 = vmatprep.subr.mxu1 %v1689_v2 }
 0x124   :  { %v1594_v45 = vpop.eup %1593 }
 0x125   :  { %1548 = vmatpush3.xpose.msk.msra.mxu1 %vm191_vm1, %v1804_v8 }
 0x126   :  { %1549 = vmatprep.subr.mxu1 %v1689_v2 }
 0x129   :  { %1550 = vmatpush3.xpose.msk.msra.mxu1 %vm191_vm1, %v1820_v10 }
 0x12a   :  { %1551 = vmatprep.subr.mxu1 %v1689_v2 }
 0x12d   :  { %1552 = vmatpush3.xpose.msk.msra.mxu1 %vm191_vm1, %v1836_v12 }
 0x12e   :  { %1553 = vmatprep.subr.mxu1 %v1689_v2 }
 0x131   :  { %1554 = vmatpush3.xpose.msk.msra.mxu1 %vm191_vm1, %v1852_v14 }
 0x132   :  { %1555 = vmatprep.subr.mxu1 %v1689_v2 }
 0x135   :  { %1556 = vmatpush3.xpose.msk.msra.mxu1 %vm191_vm1, %v1868_v16 }
 0x136   :  { %1557 = vmatprep.subr.mxu1 %v1689_v2 }
 0x139   :  { %1558 = vmatpush3.xpose.msk.msra.mxu1 %vm191_vm1, %v1884_v18 }
 0x13a   :  { %1559 = vmatprep.subr.mxu1 %v1689_v2 }
 0x13d   :  { %1560 = vmatpush3.xpose.msk.msra.mxu1 %vm191_vm1, %v1900_v20 }
 0x13e   :  { %1561 = vmatprep.subr.mxu1 %v1689_v2 }
 0x141   :  { %1562 = vmatpush3.xpose.msk.msra.mxu1 %vm191_vm1, %v1916_v22 }
 0x142   :  { %v485_v56 = vpop.f32.mrf.mxu1  ;;  %1563 = vmatprep.subr.mxu1 %v1689_v2 }
 0x144   :  { %v1435_v57 = vpop.f32.mrf.mxu1 }
 0x145   :  { %1564 = vmatpush3.xpose.msk.msra.mxu1 %vm191_vm1, %v1932_v24 }
 0x146   :  { %1565 = vmatprep.subr.mxu1 %v1689_v2 }
 0x149   :  { %1566 = vmatpush3.xpose.msk.msra.mxu1 %vm191_vm1, %v1948_v26 }
 0x14a   :  { %1567 = vmatprep.subr.mxu1 %v1689_v2 }
 0x14d   :  { %1568 = vmatpush3.xpose.msk.msra.mxu1 %vm191_vm1, %v1964_v28 }
 0x14e   :  { %1569 = vmatprep.subr.mxu1 %v1689_v2 }
 0x151   :  { %1570 = vmatpush3.xpose.msk.msra.mxu1 %vm191_vm1, %v1980_v30 }
 0x152   :  { %1571 = vmatprep.subr.mxu1 %v1689_v2 }
 0x155   :  { %1572 = vmatpush3.xpose.msk.msra.mxu1 %vm191_vm1, %v1996_v32 }
 0x185   :  { %v327_v46 = vpop.permute.xlu0 %326 }
 0x186   :  { %v329_v47 = vmul.f32 %v1594_v45, %v327_v46 }
 0x188   :  { %331 = vrot.lane.b32.xlu1 %v329_v47, %s1692_s29 }
 0x189   :  { %v322_v48 = vpop.permute.xlu0 %321 }
 0x18a   :  { %v324_v49 = vmul.f32 %v1594_v45, %v322_v48 }
 0x1d8   :  { %v657_v10 = vpop.f32.mrf.mxu1 }
 0x1da   :  { %v1505_v12 = vpop.f32.mrf.mxu1 }
 0x1fa   :  { %v332_v50 = vpop.permute.xlu1 %331 }
 0x1fb   :  { %v2118_v51 = vadd.f32 %v332_v50, %v324_v49 }
 0x1fd   :  { %1595 = vtanh.f32 %v2118_v51 }
 0x20a   :  { %v1596_v53 = vpop.eup %1595 }
 0x20b   :  { %337 = vrot.lane.b32.xlu1 %v1596_v53, %s1691_s1 }
 0x27d   :  { %v338_v54 = vpop.permute.xlu1 %337 }
 0x27e   :  { %v2176_v55 = vmul.f32 %v1594_v45, %v338_v54 }
 0x280   :  { %342 = vrot.lane.b32.xlu0 %v2176_v55, %s1692_s29  ;;  %v868_v4 = vrot.slane %v2176_v55, 1 }
 0x2f2   :  { %v343_v58 = vpop.permute.xlu0 %342 }
 0x2f3   :  { %1399 = vmatmul.mubr.msk.f32.vlgmr.msra.gmra.mxu0 %vm69_vm0, %v343_v58 }
 0x2f4   :  { %1437 = vmatpush3.xpose.msk.msra.mxu0 %vm69_vm0, %v1745_v0  ;;  %1468 = vmatprep.mubr.msk.f32.mxu0 %vm1690_vm2, %v1689_v2 }
 0x2f5   :  { %1438 = vmatprep.subr.mxu0 %v1689_v2 }
 0x2f8   :  { %1439 = vmatpush3.xpose.msk.msra.mxu0 %vm69_vm0, %v1763_v3 }
 0x2f9   :  { %1440 = vmatprep.subr.mxu0 %v1689_v2 }
 0x2fc   :  { %1441 = vmatpush3.xpose.msk.msra.mxu0 %vm69_vm0, %v1783_v5 }
 0x2fd   :  { %1442 = vmatprep.subr.mxu0 %v1689_v2 }
 0x300   :  { %1443 = vmatpush3.xpose.msk.msra.mxu0 %vm69_vm0, %v1799_v7 }
 0x301   :  { %1444 = vmatprep.subr.mxu0 %v1689_v2 }
 0x304   :  { %1445 = vmatpush3.xpose.msk.msra.mxu0 %vm69_vm0, %v1815_v9 }
 0x305   :  { %1446 = vmatprep.subr.mxu0 %v1689_v2 }
 0x308   :  { %1447 = vmatpush3.xpose.msk.msra.mxu0 %vm69_vm0, %v1831_v11 }
 0x309   :  { %1448 = vmatprep.subr.mxu0 %v1689_v2 }
 0x30c   :  { %1449 = vmatpush3.xpose.msk.msra.mxu0 %vm69_vm0, %v1847_v13 }
 0x30d   :  { %1450 = vmatprep.subr.mxu0 %v1689_v2 }
 0x310   :  { %1451 = vmatpush3.xpose.msk.msra.mxu0 %vm69_vm0, %v1863_v15 }
 0x311   :  { %1452 = vmatprep.subr.mxu0 %v1689_v2 }
 0x314   :  { %1453 = vmatpush3.xpose.msk.msra.mxu0 %vm69_vm0, %v1879_v17 }
 0x315   :  { %1454 = vmatprep.subr.mxu0 %v1689_v2 }
 0x318   :  { %1455 = vmatpush3.xpose.msk.msra.mxu0 %vm69_vm0, %v1895_v19 }
 0x319   :  { %1456 = vmatprep.subr.mxu0 %v1689_v2 }
 0x31c   :  { %1457 = vmatpush3.xpose.msk.msra.mxu0 %vm69_vm0, %v1911_v21 }
 0x31d   :  { %1458 = vmatprep.subr.mxu0 %v1689_v2 }
 0x320   :  { %1459 = vmatpush3.xpose.msk.msra.mxu0 %vm69_vm0, %v1927_v23 }
 0x321   :  { %1460 = vmatprep.subr.mxu0 %v1689_v2 }
 0x324   :  { %1461 = vmatpush3.xpose.msk.msra.mxu0 %vm69_vm0, %v1943_v25 }
 0x325   :  { %1462 = vmatprep.subr.mxu0 %v1689_v2 }
 0x328   :  { %1463 = vmatpush3.xpose.msk.msra.mxu0 %vm69_vm0, %v1959_v27 }
 0x329   :  { %1464 = vmatprep.subr.mxu0 %v1689_v2 }
 0x32c   :  { %1465 = vmatpush3.xpose.msk.msra.mxu0 %vm69_vm0, %v1975_v29 }
 0x32d   :  { %1466 = vmatprep.subr.mxu0 %v1689_v2 }
 0x330   :  { %1467 = vmatpush3.xpose.msk.msra.mxu0 %vm69_vm0, %v1991_v31 }
 0x331   :  { %1506 = vmatprep.subr.mxu0 %v1689_v2 }
 0x3b3   :  { %v412_v59 = vpop.f32.mrf.mxu0 }
 0x3b4   :  { %v486_v60 = vadd.f32 %v485_v56, %v412_v59 }
 0x3b5   :  { %v1400_v61 = vpop.f32.mrf.mxu0 }
 0x3b6   :  { %1597 = vtanh.f32 %v486_v60  ;;  %v1085_v63 = vmul.f32 -1.442695, %v486_v60 }
 0x3b8   :  { %1599 = vpow2.f32 %v1085_v63 }
 0x3c3   :  { %v1598_v62 = vpop.eup %1597 }
 0x3c4   :  { %498 = vrot.lane.b32.xlu1 %v1598_v62, %s1691_s1 }
 0x3c5   :  { %v1600_v33 = vpop.eup %1599 }
 0x3c6   :  { %v492_v34 = vadd.f32 1.0, %v1600_v33 }
 0x3c8   :  { %1601 = vrcp.f32 %v492_v34 }
 0x3d5   :  { %v1602_v35 = vpop.eup %1601 }
 0x3d6   :  { %v496_v38 = vmul.f32 %v1602_v35, %v2118_v51 }
 0x436   :  { %v499_v36 = vpop.permute.xlu1 %498 }
 0x437   :  { %v501_v37 = vmul.f32 %v1602_v35, %v499_v36 }
 0x439   :  { %503 = vrot.lane.b32.xlu0 %v501_v37, %s1692_s29 }
 0x4ab   :  { %v504_v39 = vpop.permute.xlu0 %503 }
 0x4ac   :  { %v2234_v40 = vadd.f32 %v504_v39, %v496_v38 }
 0x4ae   :  { %1603 = vtanh.f32 %v2234_v40 }
 0x4bb   :  { %v1604_v42 = vpop.eup %1603 }
 0x4bc   :  { %509 = vrot.lane.b32.xlu1 %v1604_v42, %s1691_s1 }
 0x52e   :  { %v510_v1 = vpop.permute.xlu1 %509 }
 0x52f   :  { %v512_v6 = vmul.f32 %v1602_v35, %v510_v1 }
 0x531   :  { %v2292_v8 = vsel %vm874_vm3, %v868_v4, %v512_v6  ;;  %514 = vrot.lane.b32.xlu0 %v512_v6, %s1692_s29 }
 0x5a3   :  { %v515_v14 = vpop.permute.xlu0 %514 }
 0x5a4   :  { %1469 = vmatmul.mubr.msk.f32.vlgmr.msra.gmra.mxu0 %vm69_vm0, %v515_v14 }
 0x5a5   :  { %1507 = vmatpush3.xpose.msk.msra.mxu0 %vm69_vm0, %v1745_v0  ;;  %1538 = vmatprep.mubr.msk.f32.mxu0 %vm1690_vm2, %v1689_v2 }
 0x5a6   :  { %1508 = vmatprep.subr.mxu0 %v1689_v2 }
 0x5a9   :  { %1509 = vmatpush3.xpose.msk.msra.mxu0 %vm69_vm0, %v1763_v3 }
 0x5aa   :  { %1510 = vmatprep.subr.mxu0 %v1689_v2 }
 0x5ad   :  { %1511 = vmatpush3.xpose.msk.msra.mxu0 %vm69_vm0, %v1783_v5 }
 0x5ae   :  { %1512 = vmatprep.subr.mxu0 %v1689_v2 }
 0x5b1   :  { %1513 = vmatpush3.xpose.msk.msra.mxu0 %vm69_vm0, %v1799_v7 }
 0x5b2   :  { %1514 = vmatprep.subr.mxu0 %v1689_v2 }
 0x5b5   :  { %1515 = vmatpush3.xpose.msk.msra.mxu0 %vm69_vm0, %v1815_v9 }
 0x5b6   :  { %1516 = vmatprep.subr.mxu0 %v1689_v2 }
 0x5b9   :  { %1517 = vmatpush3.xpose.msk.msra.mxu0 %vm69_vm0, %v1831_v11 }
 0x5ba   :  { %1518 = vmatprep.subr.mxu0 %v1689_v2 }
 0x5bd   :  { %1519 = vmatpush3.xpose.msk.msra.mxu0 %vm69_vm0, %v1847_v13 }
 0x5be   :  { %1520 = vmatprep.subr.mxu0 %v1689_v2 }
 0x5c1   :  { %1521 = vmatpush3.xpose.msk.msra.mxu0 %vm69_vm0, %v1863_v15 }
 0x5c2   :  { %1522 = vmatprep.subr.mxu0 %v1689_v2 }
 0x5c5   :  { %1523 = vmatpush3.xpose.msk.msra.mxu0 %vm69_vm0, %v1879_v17 }
 0x5c6   :  { %1524 = vmatprep.subr.mxu0 %v1689_v2 }
 0x5c9   :  { %1525 = vmatpush3.xpose.msk.msra.mxu0 %vm69_vm0, %v1895_v19 }
 0x5ca   :  { %1526 = vmatprep.subr.mxu0 %v1689_v2 }
 0x5cd   :  { %1527 = vmatpush3.xpose.msk.msra.mxu0 %vm69_vm0, %v1911_v21  ;;  %v1015_v21 = vld [vmem:[%s2383_s0 + $0x6] sm:$0x3] }
 0x5ce   :  { %1528 = vmatprep.subr.mxu0 %v1689_v2  ;;  %1574 = vmatmul.mubr.msk.f32.vlgmr.msra.gmra.mxu1 %vm191_vm1, %v1015_v21 }
 0x5d1   :  { %1529 = vmatpush3.xpose.msk.msra.mxu0 %vm69_vm0, %v1927_v23 }
 0x5d2   :  { %1530 = vmatprep.subr.mxu0 %v1689_v2 }
 0x5d5   :  { %1531 = vmatpush3.xpose.msk.msra.mxu0 %vm69_vm0, %v1943_v25 }
 0x5d6   :  { %1532 = vmatprep.subr.mxu0 %v1689_v2 }
 0x5d9   :  { %1533 = vmatpush3.xpose.msk.msra.mxu0 %vm69_vm0, %v1959_v27 }
 0x5da   :  { %1534 = vmatprep.subr.mxu0 %v1689_v2 }
 0x5dd   :  { %1535 = vmatpush3.xpose.msk.msra.mxu0 %vm69_vm0, %v1975_v29 }
 0x5de   :  { %1536 = vmatprep.subr.mxu0 %v1689_v2 }
 0x5e1   :  { %1537 = vmatpush3.xpose.msk.msra.mxu0 %vm69_vm0, %v1991_v31 }
 0x5e2   :  { %1576 = vmatprep.subr.mxu0 %v1689_v2 }
 0x664   :  { %v584_v0 = vpop.f32.mrf.mxu0 }
 0x665   :  { %v658_v3 = vadd.f32 %v657_v10, %v584_v0 }
 0x666   :  { %v1470_v5 = vpop.f32.mrf.mxu0 }
 0x667   :  { %1605 = vtanh.f32 %v658_v3  ;;  %v1120_v9 = vmul.f32 -1.442695, %v658_v3 }
 0x669   :  { %1607 = vpow2.f32 %v1120_v9 }
 0x674   :  { %v1606_v7 = vpop.eup %1605 }
 0x675   :  { %670 = vrot.lane.b32.xlu1 %v1606_v7, %s1691_s1 }
 0x676   :  { %v1608_v11 = vpop.eup %1607 }
 0x677   :  { %v664_v13 = vadd.f32 1.0, %v1608_v11 }
 0x679   :  { %1609 = vrcp.f32 %v664_v13 }
 0x686   :  { %v1610_v15 = vpop.eup %1609 }
 0x687   :  { %v668_v18 = vmul.f32 %v1610_v15, %v2234_v40 }
 0x68e   :  { %v829_v27 = vpop.f32.mrf.mxu1 }
 0x690   :  { %v1575_v28 = vpop.f32.mrf.mxu1 }
 0x6e7   :  { %v671_v16 = vpop.permute.xlu1 %670 }
 0x6e8   :  { %v673_v17 = vmul.f32 %v1610_v15, %v671_v16 }
 0x6ea   :  { %675 = vrot.lane.b32.xlu0 %v673_v17, %s1692_s29 }
 0x75c   :  { %v676_v19 = vpop.permute.xlu0 %675 }
 0x75d   :  { %v678_v20 = vadd.f32 %v676_v19, %v668_v18 }
 0x75f   :  { %1611 = vtanh.f32 %v678_v20 }
 0x76c   :  { %v1612_v22 = vpop.eup %1611 }
 0x76d   :  { %681 = vrot.lane.b32.xlu1 %v1612_v22, %s1691_s1 }
 0x7df   :  { %v682_v23 = vpop.permute.xlu1 %681 }
 0x7e0   :  { %v684_v24 = vmul.f32 %v1610_v15, %v682_v23 }
 0x7e2   :  { %v870_v25 = vrot.slane %v684_v24, 7  ;;  %686 = vrot.lane.b32.xlu0 %v684_v24, %s1692_s29 }
 0x7e4   :  { %v877_v26 = vsel %vm876_vm4, %v2292_v8, %v870_v25 }
 0x854   :  { %v687_v29 = vpop.permute.xlu0 %686 }
 0x855   :  { %1539 = vmatmul.mubr.msk.f32.vlgmr.msra.gmra.mxu0 %vm69_vm0, %v687_v29 }
 0x856   :  { %1578 = vmatprep.mubr.msk.f32.mxu0 %vm1690_vm2, %v1689_v2  ;;  %1577 = vmatpush3.xpose.msk.msra.mxu0 %vm69_vm0, %v880_v52 }
 0x915   :  { %v756_v30 = vpop.f32.mrf.mxu0 }
 0x916   :  { %v830_v31 = vadd.f32 %v829_v27, %v756_v30 }
 0x917   :  { %v1540_v32 = vpop.f32.mrf.mxu0 }
 0x918   :  { %1613 = vtanh.f32 %v830_v31  ;;  %v1155_v44 = vmul.f32 -1.442695, %v830_v31 }
 0x91a   :  { %1615 = vpow2.f32 %v1155_v44 }
 0x925   :  { %v1614_v43 = vpop.eup %1613 }
 0x926   :  { %842 = vrot.lane.b32.xlu1 %v1614_v43, %s1691_s1 }
 0x927   :  { %v1616_v45 = vpop.eup %1615 }
 0x928   :  { %v836_v46 = vadd.f32 1.0, %v1616_v45 }
 0x92a   :  { %1617 = vrcp.f32 %v836_v46 }
 0x937   :  { %v1618_v47 = vpop.eup %1617 }
 0x938   :  { %v840_v50 = vmul.f32 %v1618_v47, %v678_v20 }
 0x998   :  { %v843_v48 = vpop.permute.xlu1 %842 }
 0x999   :  { %v845_v49 = vmul.f32 %v1618_v47, %v843_v48 }
 0x99b   :  { %847 = vrot.lane.b32.xlu0 %v845_v49, %s1692_s29 }
 0xa0d   :  { %v848_v51 = vpop.permute.xlu0 %847 }
 0xa0e   :  { %v850_v2 = vadd.f32 %v848_v51, %v840_v50 }
 0xa10   :  { %1619 = vtanh.f32 %v850_v2 }
 0xa1d   :  { %v1620_v53 = vpop.eup %1619 }
 0xa1e   :  { %853 = vrot.lane.b32.xlu1 %v1620_v53, %s1691_s1 }
 0xa90   :  { %v854_v54 = vpop.permute.xlu1 %853 }
 0xa91   :  { %v856_v55 = vmul.f32 %v1618_v47, %v854_v54 }
 0xa93   :  { %v872_v56 = vrot.slane %v856_v55, 6 }
 0xa95   :  { %v879_v57 = vsel %vm878_vm5, %v877_v26, %v872_v56 }
 0xa96   :  { %882 = vrot.lane.b32.xlu0 %v879_v57, %s1692_s29 }
 0xb08   :  { %v883_v58 = vpop.permute.xlu0 %882 }
 0xb09   :  { %1579 = vmatmul.mubr.msk.f32.vlgmr.msra.gmra.mxu0 %vm69_vm0, %v883_v58 }
 0xbc9   :  { %v955_v59 = vpop.f32.mrf.mxu0 }
 0xbca   :  { %v960_v60 = vsel %vm959_vm6, %v955_v59, -inf }
 0xbcb   :  { %961 = vmax.xlane.f32.xlu1 %v960_v60  ;;  %v1580_v61 = vpop.f32.mrf.mxu0 }
 0xbdc   :  { %864 = vrot.lane.b32.xlu1 %v850_v2, %s1693_s5 }
 0xc54   :  { %v962_v62 = vpop.xlane.xlu1 %961 }
 0xc55   :  { %v963_v63 = vsub.f32 %v955_v59, %v962_v62 }
 0xc57   :  { %v964_v33 = vmul.f32 1.442695, %v963_v63 }
 0xc58   :  { %v865_v34 = vpop.permute.xlu1 %864 }
 0xc59   :  { %1621 = vpow2.f32 %v964_v33  ;;  %867 = vst.msk [vmem:[#allocation6] sm:$0x3] %vm861_vm7, %v865_v34 }
 0xc66   :  { %v1622_v35 = vpop.eup %1621 }
 0xc67   :  { %v966_v36 = vsel %vm959_vm6, %v1622_v35, 0.0 }
 0xc68   :  { %967 = vadd.xlane.f32.xlu0 %v966_v36 }
 0xc7e   :  { %858 = vrot.lane.b32.xlu0 %v856_v55, %s1692_s29 }
 0xcf1   :  { %v968_v37 = vpop.xlane.xlu0 %967 }
 0xcf2   :  { %1623 = vrcp.f32 %v968_v37 }
 0xcf5   :  { %v859_v38 = vpop.permute.xlu0 %858 }
 0xcf6   :  { %862 = vst.msk [vmem:[#allocation4] sm:$0x3] %vm861_vm7, %v859_v38 }
 0xcf7   :  { %1636 = shalt.err (!%p1633_p4)
}
 0xcf8   :  { %991 = dma.vmem_to_hbm [thread:$0]  %s989_s15, 32, %s2390_s7, [#allocation5]  }
 0xcf9   :  { %s1645_s21 = scalar_lea.vmem %s999_s17, 32  ;;  %p1650_p6 = scmp.lt.s32.totalorder %s999_s17, %s999_s17 }
 0xcfa   :  { %p1646_p5 = scmp.ne.s32.totalorder %s999_s17, %s1645_s21  ;;  %p1651_p7 = scmp.lt.s32.totalorder %s1645_s21, %s1645_s21 }
 0xcfc   :  { %p1652_p8 = por %p1651_p7, %p1650_p6 }
 0xcfe   :  { %p1653_p9 = pnand %p1652_p8, %p1646_p5 }
 0xd00   :  { %1656 = shalt.err (!%p1653_p9)
}
 0xd01   :  { %1001 = dma.vmem_to_hbm [thread:$0]  %s999_s17, 32, %s2391_s8, [#allocation5]   ;;  %v1624_v39 = vpop.eup %1623 }
 0xd02   :  { %s1696_s24 = smov [#allocation2]   ;;  %v970_v40 = vmul.f32 %v1624_v39, %v1622_v35 }
 0xd03   :  { %s978_s25 = sshll.u32 %s1696_s24, 4  ;;  %s979_s25 = int_to_ptr.vmem [resolvable:$true] %s978_s25 }
 0xd04   :  { %971 = vst.msk [vmem:[#allocation2] sm:$0xf] %vm959_vm6, %v970_v40  ;;  %s1665_s26 = scalar_lea.vmem %s979_s25, 64  ;;  %p1670_p11 = scmp.lt.s32.totalorder %s979_s25, %s979_s25 }
 0xd05   :  { %p1666_p10 = scmp.ne.s32.totalorder %s979_s25, %s1665_s26  ;;  %p1671_p12 = scmp.lt.s32.totalorder %s1665_s26, %s1665_s26 }
 0xd07   :  { %p1672_p13 = por %p1671_p12, %p1670_p11 }
 0xd09   :  { %p1673_p0 = pnand %p1672_p13, %p1666_p10 }
 0xd0b   :  { %1676 = shalt.err (!%p1673_p0)
}
 0xd0c   :  { %981 = dma.vmem_to_hbm [thread:$0]  %s979_s25, 64, %s2389_s6, [#allocation3]  }
 0xd0d   :  { %1685 = dma.done.wait [#allocation3], 64  }
 0xd0e   :  { %1686 = vsyncadd [#allocation3], 4294967232 }
 0xd0f   :  { %1687 = dma.done.wait [#allocation5], 64  }
 0xd10   :  { %1688 = vsyncadd [#allocation5], 4294967232 }
 0xd11   :  { %1011 = vsyncpa [#allocation3], 1 }
 0xd12   :  { %1012 = vsyncpa [#allocation5], 1 }

</bundles_post_ra>
